<compile_context>
chip_gen: v6e
topology: v6e:2x2x1
jax: 0.10.0
libtpu: 0.0.40
codegen_flags: <defaults>
</compile_context>

<pallas_src>
import math

import jax
import jax.numpy as jnp
from jax.experimental import pallas as pl
from jax.experimental.pallas import tpu as pltpu


# ----------------------------------------------------------------------------
# Kernel 1: FeedAttention pooling (tanh(h @ w) -> softmax over L -> weighted sum)
#           batch-tiled over a "parallel" grid axis, MXU contractions.
# ----------------------------------------------------------------------------
def feed_attention_kernel(h_ref, w_ref, o_ref):
    h = h_ref[...]                                   # [TB, L, H] bf16
    TB, L, H = h.shape
    w = w_ref[...].astype(h.dtype)                   # [1, H]

    # Scores: contraction over H on the MXU (k=1 "key" = attention weight row).
    wq = jnp.broadcast_to(w[None, :, :], (TB, 1, H))                 # [TB,1,H]
    s = jnp.einsum('bqh,blh->bql', wq, h,
                   preferred_element_type=jnp.float32)[:, 0, :]      # [TB,L] f32
    s = jnp.tanh(s)

    # Softmax over L (lane axis); normalization folded into the final scale.
    m = jnp.max(s, axis=-1, keepdims=True)
    e = jnp.exp(s - m)                                               # [TB,L]
    denom = jnp.sum(e, axis=-1, keepdims=True)                       # [TB,1]

    # Weighted sum over L: batched MXU matmul, lane-dense H=1024 output.
    p = jnp.einsum('bql,blh->bqh', e[:, None, :].astype(h.dtype), h,
                   preferred_element_type=jnp.float32)[:, 0, :]      # [TB,H] f32

    o_ref[...] = p * pl.reciprocal(denom, approx=True)               # [TB,H]


def _pick_batch_tile(total_b, row_bytes, budget_bytes):
    """Largest batch tile that divides total_b, fits the VMEM budget and keeps
    the pooled-output block sublane-aligned (tb % 8 == 0) when tiling."""
    if total_b * row_bytes <= budget_bytes:
        return total_b
    cap = max(1, budget_bytes // row_bytes)
    for tb in range(min(cap, total_b), 0, -1):
        if total_b % tb == 0 and tb % 8 == 0:
            return tb
    return total_b  # fall back to a single (large) tile


def feed_attention(h_bf16, w_row, *, tb=None, vmem_budget_bytes=4 << 20):
    """h_bf16: [Bt, L, H] bf16, w_row: [1, H] f32 -> pooled [Bt, H] f32."""
    Bt, L, H = h_bf16.shape
    row_bytes = L * H * h_bf16.dtype.itemsize
    if tb is None:
        tb = _pick_batch_tile(Bt, row_bytes, vmem_budget_bytes)
    grid = (Bt // tb,)
    return pl.pallas_call(
        feed_attention_kernel,
        out_shape=jax.ShapeDtypeStruct((Bt, H), jnp.float32),
        grid_spec=pltpu.PrefetchScalarGridSpec(
            num_scalar_prefetch=0,
            grid=grid,
            in_specs=[
                pl.BlockSpec((tb, L, H), lambda b: (b, 0, 0)),
                pl.BlockSpec((1, H), lambda b: (0, 0)),
            ],
            out_specs=pl.BlockSpec((tb, H), lambda b: (b, 0)),
        ),
        compiler_params=pltpu.CompilerParams(
            dimension_semantics=("parallel",)),
    )(h_bf16, w_row)


# ----------------------------------------------------------------------------
# Kernel 2: fused BatchNorm1d (per-branch batch stats) + MLP 1024->...->1
#           for BOTH branches (wild & mutant) + final subtraction.
#           Weights are DMA'd once; MXU rows = 2B.
# ----------------------------------------------------------------------------
def bn_mlp_sub_kernel(x_ref, gamma_ref, beta_ref,
                      w1, b1, w2, b2, w3, b3, w4, b4, w5, b5,
                      o_ref):
    x = x_ref[...]                                   # [2, B, 1024] f32
    two, B, H = x.shape

    # BatchNorm1d, training mode: batch mean / biased variance per branch
    # (stats are NOT mixed across wild/mutant, matching two separate calls).
    mean = jnp.mean(x, axis=1, keepdims=True)                        # [2,1,H]
    var = jnp.mean((x - mean) ** 2, axis=1, keepdims=True)
    hn = (x - mean) * jax.lax.rsqrt(var + 1e-5)
    hn = hn * gamma_ref[...][None] + beta_ref[...][None]             # [2,B,H]
    # TODO(synk): Dropout(0.3) -> identity (eval mode).

    # Stack branches so every MXU matmul runs with M = 2B rows.
    h = hn.reshape(two * B, H)                                       # [2B, H]

    def lin_relu(v, w_ref_, b_ref_):
        y = jnp.dot(v, w_ref_[...], preferred_element_type=jnp.float32) + b_ref_[...]
        return jnp.maximum(y, 0.0)

    h = lin_relu(h, w1, b1)        # 1024 -> 512
    h = lin_relu(h, w2, b2)        # 512  -> 256
    h = lin_relu(h, w3, b3)        # 256  -> 128
    h = lin_relu(h, w4, b4)        # 128  -> 32
    # 32 -> 1 tail on the VPU/XLU (w5 stored as a [1, 32] row).
    y = jnp.sum(h * w5[...], axis=-1, keepdims=True) + b5[...]       # [2B, 1]

    o_ref[...] = y[B:, :] - y[:B, :]                 # mutant - wild, [B, 1]


def bn_mlp_sub(pooled, gamma, beta, mlp_params):
    """pooled: [2, B, H] f32 (index 0 = wild, 1 = mutant) -> [B, 1] f32."""
    two, B, H = pooled.shape
    args = [pooled, gamma, beta]
    for w, b in mlp_params:
        args += [w, b]
    return pl.pallas_call(
        bn_mlp_sub_kernel,
        out_shape=jax.ShapeDtypeStruct((B, 1), jnp.float32),
        in_specs=[pl.BlockSpec(memory_space=pltpu.MemorySpace.VMEM)] * len(args),
        out_specs=pl.BlockSpec(memory_space=pltpu.MemorySpace.VMEM),
    )(*args)


# ----------------------------------------------------------------------------
# Parameter construction (deterministic, mimics PyTorch default inits)
# ----------------------------------------------------------------------------
def make_params(hidden=1024, vocab=32):
    key = jax.random.PRNGKey(0)
    keys = jax.random.split(key, 16)

    # Stand-in embedding table (glue; replaces ProtBert last_hidden_state).
    emb_table = jax.random.normal(keys[0], (vocab, hidden), jnp.float32) * 0.02

    # FeedAttention weight: PyTorch [emb_size, 1], stored here as a [1, H] row.
    # (FeedAttention bias [max_len, 1] exists in __init__ but is never used in
    #  forward, so it is not materialized.)
    att_w = jax.random.uniform(keys[1], (1, hidden), jnp.float32, -1.0, 1.0)

    # BatchNorm1d(1024)
    gamma = jnp.ones((1, hidden), jnp.float32)
    beta = jnp.zeros((1, hidden), jnp.float32)

    # fussion_module4protbert: 1024->512->256->128->32->1, stored as [in,out]
    # (+ bias [1,out]); the final 32->1 weight stored as a [1, 32] row.
    dims = [hidden, 512, 256, 128, 32, 1]
    mlp = []
    n_layers = len(dims) - 1
    for i, (fin, fout) in enumerate(zip(dims[:-1], dims[1:])):
        bound = 1.0 / math.sqrt(fin)
        if i == n_layers - 1:
            w = jax.random.uniform(keys[2 + 2 * i], (1, fin), jnp.float32,
                                   -bound, bound)
        else:
            w = jax.random.uniform(keys[2 + 2 * i], (fin, fout), jnp.float32,
                                   -bound, bound)
        b = jax.random.uniform(keys[3 + 2 * i], (1, fout), jnp.float32,
                               -bound, bound)
        mlp.append((w, b))

    return dict(emb_table=emb_table, att_w=att_w, gamma=gamma, beta=beta,
                mlp=mlp)


# ----------------------------------------------------------------------------
# Full module forward (wild & mutant branches fused into single kernel calls)
# ----------------------------------------------------------------------------
def pontbert_forward(params, wild_ids, wild_mask, mutant_ids, mutant_mask,
                     bioinfo):
    # `bioinfo` is accepted but unused (matches the PyTorch forward).
    # `*_mask` would only feed the external ProtBert model, which is stubbed.
    del wild_mask, mutant_mask, bioinfo
    B, L = wild_ids.shape

    # Fuse both branches along batch: rows [0:B] = wild, [B:2B] = mutant.
    ids = jnp.concatenate([wild_ids, mutant_ids], axis=0)             # [2B, L]
    # TODO(synk): external ProtBert embedding_model replaced by table lookup.
    h = params["emb_table"][ids].astype(jnp.bfloat16)                 # [2B,L,H]

    pooled = feed_attention(h, params["att_w"])                       # [2B, H]
    pooled = pooled.reshape(2, B, pooled.shape[-1])                   # [2, B, H]

    # BN (per-branch stats) + MLP + (mutant - wild) in one fused call.
    return bn_mlp_sub(pooled, params["gamma"], params["beta"], params["mlp"])


# ----------------------------------------------------------------------------
if __name__ == "__main__":
    B, L, H, VOCAB = 2, 8, 1024, 32

    params = make_params(hidden=H, vocab=VOCAB)

    key = jax.random.PRNGKey(0)
    k1, k2, k3 = jax.random.split(key, 3)
    wild_ids = jax.random.randint(k1, (B, L), 0, VOCAB, dtype=jnp.int32)
    mutant_ids = jax.random.randint(k2, (B, L), 0, VOCAB, dtype=jnp.int32)
    wild_mask = jnp.ones((B, L), jnp.int32)
    mutant_mask = jnp.ones((B, L), jnp.int32)
    bioinfo = jax.random.normal(k3, (B, 16), jnp.float32)  # unused, as in torch

    out = pontbert_forward(params, wild_ids, wild_mask,
                           mutant_ids, mutant_mask, bioinfo)
    out = jax.block_until_ready(out)
    assert out.shape == (B, 1) and out.dtype == jnp.float32
    print("KERNEL_OK")
</pallas_src>

<mosaic_0001>
module attributes {stable_mosaic.version = 11 : i64} {
  func.func @feed_attention_kernel(%arg0: i32, %arg1: memref<4x8x1024xbf16, #tpu.memory_space<vmem>>, %arg2: memref<1x1024xf32, #tpu.memory_space<vmem>>, %arg3: memref<4x1024xf32, #tpu.memory_space<vmem>>) attributes {dimension_semantics = [#tpu.dimension_semantics<parallel>], iteration_bounds = array<i64: 1>, scalar_prefetch = 0 : i64, scratch_operands = 0 : i64, tpu.core_type = #tpu.core_type<tc>, window_params = [{transform_indices = @transform_0, window_bounds = array<i64: 4, 8, 1024>}, {pipeline_mode = #tpu.pipeline_mode<synchronous>, transform_indices = @transform_1, window_bounds = array<i64: 1, 1024>}, {transform_indices = @transform_2, window_bounds = array<i64: 4, 1024>}]} {
    %c0 = arith.constant 0 : index
    %c0_0 = arith.constant 0 : index
    %c0_1 = arith.constant 0 : index
    %0 = vector.load %arg1[%c0, %c0_0, %c0_1] : memref<4x8x1024xbf16, #tpu.memory_space<vmem>>, vector<4x8x1024xbf16>
    %c0_2 = arith.constant 0 : index
    %c0_3 = arith.constant 0 : index
    %1 = vector.load %arg2[%c0_2, %c0_3] : memref<1x1024xf32, #tpu.memory_space<vmem>>, vector<1x1024xf32>
    %2 = arith.truncf %1 : vector<1x1024xf32> to vector<1x1024xbf16>
    %3 = vector.shape_cast %2 : vector<1x1024xbf16> to vector<1x1x1024xbf16>
    %4 = vector.shape_cast %3 : vector<1x1x1024xbf16> to vector<1x1x1024xbf16>
    %5 = vector.broadcast %4 : vector<1x1x1024xbf16> to vector<4x1x1024xbf16>
    "tpu.trace_start"() <{level = 10 : i32, message = "bqh,blh->bql"}> : () -> ()
    %cst = arith.constant dense<0.000000e+00> : vector<4x1x8xf32>
    %6 = tpu.matmul %5, %0, %cst {dimension_numbers = #tpu.dot_dimension_numbers<[2], [2], [1], [1], [0, 0, 0, 1, 1, 1], [0], [0]>} : vector<4x1x1024xbf16>, vector<4x8x1024xbf16>, vector<4x1x8xf32> -> vector<4x1x8xf32>
    "tpu.trace_stop"() : () -> ()
    %7 = vector.shape_cast %6 : vector<4x1x8xf32> to vector<4x8xf32>
    %8 = math.tanh %7 : vector<4x8xf32>
    %cst_4 = arith.constant dense<0xFF800000> : vector<4xf32>
    %9 = vector.multi_reduction <maximumf>, %8, %cst_4 [1] : vector<4x8xf32> to vector<4xf32>
    %10 = vector.shape_cast %9 : vector<4xf32> to vector<4x1xf32>
    %11 = vector.broadcast %10 : vector<4x1xf32> to vector<4x8xf32>
    %12 = arith.subf %8, %11 : vector<4x8xf32>
    %13 = math.exp %12 : vector<4x8xf32>
    %cst_5 = arith.constant dense<0.000000e+00> : vector<4xf32>
    %14 = vector.multi_reduction <add>, %13, %cst_5 [1] : vector<4x8xf32> to vector<4xf32>
    %15 = vector.shape_cast %14 : vector<4xf32> to vector<4x1xf32>
    %16 = vector.shape_cast %13 : vector<4x8xf32> to vector<4x1x8xf32>
    %17 = arith.truncf %16 : vector<4x1x8xf32> to vector<4x1x8xbf16>
    "tpu.trace_start"() <{level = 10 : i32, message = "bql,blh->bqh"}> : () -> ()
    %cst_6 = arith.constant dense<0.000000e+00> : vector<4x1x1024xf32>
    %18 = tpu.matmul %17, %0, %cst_6 {dimension_numbers = #tpu.dot_dimension_numbers<[2], [1], [1], [2], [0, 0, 0, 1, 1, 2], [0], [0]>} : vector<4x1x8xbf16>, vector<4x8x1024xbf16>, vector<4x1x1024xf32> -> vector<4x1x1024xf32>
    "tpu.trace_stop"() : () -> ()
    %19 = vector.shape_cast %18 : vector<4x1x1024xf32> to vector<4x1024xf32>
    %20 = tpu.reciprocal %15 {approx = true} : vector<4x1xf32> -> vector<4x1xf32>
    %21 = vector.broadcast %20 : vector<4x1xf32> to vector<4x1024xf32>
    %22 = arith.mulf %19, %21 : vector<4x1024xf32>
    %c0_7 = arith.constant 0 : index
    %c0_8 = arith.constant 0 : index
    %23 = vector.load %arg3[%c0_7, %c0_8] : memref<4x1024xf32, #tpu.memory_space<vmem>>, vector<4x1024xf32>
    tpu.vector_store %arg3[%c0_7, %c0_8], %22 {strides = array<i32>} : memref<4x1024xf32, #tpu.memory_space<vmem>>, vector<4x1024xf32>,
    return
  }
  func.func @transform_0(%arg0: i32) -> (i32, i32, i32) {
    %c0_i32 = arith.constant 0 : i32
    %c0_i32_0 = arith.constant 0 : i32
    %c0_i32_1 = arith.constant 0 : i32
    return %arg0, %c0_i32, %c0_i32_0 : i32, i32, i32
  }
  func.func @transform_1(%arg0: i32) -> (i32, i32) {
    %c0_i32 = arith.constant 0 : i32
    %c0_i32_0 = arith.constant 0 : i32
    %c0_i32_1 = arith.constant 0 : i32
    return %c0_i32, %c0_i32_0 : i32, i32
  }
  func.func @transform_2(%arg0: i32) -> (i32, i32) {
    %c0_i32 = arith.constant 0 : i32
    %c0_i32_0 = arith.constant 0 : i32
    return %arg0, %c0_i32 : i32, i32
  }
}

</mosaic_0001>

<bundles_post_ra>
// kernel: tpu_custom_call.1
= control target key start
LH: loop header
LB: loop body
LE: loop exit
PB: predicated region body
PF: predicated region fallthrough
CT: control target
= control target key end

     0   :  { %7 = vsyncpa [#allocation3], 0  ;;  %s2340_s0 = inlined_call_operand.hbm [shape: bf16[4,8,1024], index: 0, kind: input, shape index: {}]   ;;  %s2341_s1 = inlined_call_operand.hbm [shape: f32[1,1024], index: 1, kind: input, shape index: {}]   ;;  %s2342_s2 = inlined_call_operand.hbm [shape: f32[4,1024], index: 2, kind: output, shape index: {}]  }
   0x1   :  { %8 = vsyncpa [#allocation6], 0 }
   0x2   :  { %9 = vsyncpa [#allocation4], 0  ;;  %s2021_s9 = smov [#allocation2]  }
   0x3   :  { %s15_s10 = sshll.u32 %s2021_s9, 4  ;;  %s16_s10 = int_to_ptr.vmem [resolvable:$true] %s15_s10 }
   0x4   :  { %s1963_s11 = scalar_lea.vmem %s16_s10, 2048  ;;  %p1968_p1 = scmp.lt.s32.totalorder %s16_s10, %s16_s10 }
   0x5   :  { %p1964_p0 = scmp.ne.s32.totalorder %s16_s10, %s1963_s11  ;;  %p1969_p2 = scmp.lt.s32.totalorder %s1963_s11, %s1963_s11 }
   0x7   :  { %p1970_p3 = por %p1969_p2, %p1968_p1 }
   0x9   :  { %p1971_p4 = pnand %p1970_p3, %p1964_p0 }
   0xb   :  { %1974 = shalt.err (!%p1971_p4)
}
   0xc   :  { %s2022_s12 = smov 512   ;;  %s2023_s13 = smov 32  }
   0xd   :  { %21 = dma.hbm_to_vmem [thread:$0]  %s2340_s0, 2048, %s16_s10, [#allocation3], %s2022_s12, %s2022_s12, %s2023_s13  }
   0xe   :  { %s2024_s16 = smov [#allocation5]  }
   0xf   :  { %s28_s17 = sshll.u32 %s2024_s16, 4  ;;  %s29_s17 = int_to_ptr.vmem [resolvable:$true] %s28_s17 }
  0x10   :  { %s1983_s18 = scalar_lea.vmem %s29_s17, 128  ;;  %p1988_p6 = scmp.lt.s32.totalorder %s29_s17, %s29_s17 }
  0x11   :  { %p1984_p5 = scmp.ne.s32.totalorder %s29_s17, %s1983_s18  ;;  %p1989_p7 = scmp.lt.s32.totalorder %s1983_s18, %s1983_s18 }
  0x13   :  { %p1990_p8 = por %p1989_p7, %p1988_p6 }
  0x15   :  { %p1991_p9 = pnand %p1990_p8, %p1984_p5 }
  0x17   :  { %1994 = shalt.err (!%p1991_p9)
}
  0x18   :  { %31 = dma.hbm_to_vmem [thread:$0]  %s2341_s1, 128, %s29_s17, [#allocation6]  }
  0x19   :  { %2015 = dma.done.wait [#allocation3], 2048  }
  0x1a   :  { %2016 = vsyncadd [#allocation3], 4294965248 }
  0x1b   :  { %2017 = dma.done.wait [#allocation6], 128  }
  0x1c   :  { %2018 = vsyncadd [#allocation6], 4294967168  ;;  %v57_v0 = vlaneseq  ;;  %v39_v6 = vld [vmem:[#allocation2] sm:$0xff]  ;;  %v40_v7 = vld [vmem:[#allocation2 + $0x8] sm:$0xff]  ;;  %vm866_vm0 = vcmask 1041409   ;;  %vm869_vm1 = vcmask 1042434  }
  0x1d   :  { %v55_v8 = vld [vmem:[#allocation5] sm:$0xff]  ;;  %v2048_v11 = vcombine.high %v39_v6, %v39_v6  ;;  %v2050_v12 = vcombine.high %v40_v7, %v40_v7  ;;  %v2052_v13 = vcombine.low %v39_v6, %v39_v6  ;;  %v2054_v14 = vcombine.low %v40_v7, %v40_v7  ;;  %v41_v15 = vld [vmem:[#allocation2 + $0x10] sm:$0xff]  ;;  %v42_v18 = vld [vmem:[#allocation2 + $0x18] sm:$0xff]  ;;  %s2026_s0 = smov [#allocation7]  }
  0x1e   :  { %v58_v1 = vshrl.u32 %v57_v0, 7  ;;  %v2058_v21 = vcombine.high %v41_v15, %v41_v15  ;;  %v2067_v24 = vcombine.high %v42_v18, %v42_v18  ;;  %v43_v31 = vld [vmem:[#allocation2 + $0x20] sm:$0xff]  ;;  %v44_v32 = vld [vmem:[#allocation2 + $0x28] sm:$0xff]  ;;  %v2076_v33 = vcombine.low %v41_v15, %v41_v15  ;;  %v45_v43 = vld [vmem:[#allocation2 + $0x30] sm:$0xff]  ;;  %s1825_s1 = sshll.u32 %s2026_s0, 4  ;;  %s1826_s1 = int_to_ptr.vmem [resolvable:$true] %s1825_s1 }
  0x1f   :  { %147 = vmatprep.subr.bf16.mxu0 %v2048_v11  ;;  %187 = vmatprep.subr.bf16.mxu1 %v2050_v12  ;;  %v2078_v34 = vcombine.low %v42_v18, %v42_v18  ;;  %v2084_v37 = vcombine.high %v43_v31, %v43_v31  ;;  %v2086_v38 = vcombine.high %v44_v32, %v44_v32  ;;  %v46_v44 = vld [vmem:[#allocation2 + $0x38] sm:$0xff]  ;;  %v47_v49 = vld [vmem:[#allocation2 + $0x40] sm:$0xff]  ;;  %v48_v50 = vld [vmem:[#allocation2 + $0x48] sm:$0xff]  ;;  %vm872_vm2 = vcmask 1043459   ;;  %s1995_s21 = scalar_lea.vmem %s1826_s1, 512  ;;  %p2000_p11 = scmp.lt.s32.totalorder %s1826_s1, %s1826_s1 }
  0x20   :  { %v63_v2 = vsub.s32 1, %v58_v1  ;;  %v71_v3 = vsub.s32 3, %v58_v1  ;;  %v59_v4 = vsub.s32 0, %v58_v1  ;;  %v67_v5 = vsub.s32 2, %v58_v1  ;;  %148 = vmatpush1.bf16.xpose.msra.mxu0 %v2052_v13  ;;  %188 = vmatpush1.bf16.xpose.msra.mxu1 %v2054_v14  ;;  %v49_v55 = vld [vmem:[#allocation2 + $0x50] sm:$0xff]  ;;  %v50_v56 = vld [vmem:[#allocation2 + $0x58] sm:$0xff]  ;;  %p1996_p10 = scmp.ne.s32.totalorder %s1826_s1, %s1995_s21  ;;  %p2001_p12 = scmp.lt.s32.totalorder %s1995_s21, %s1995_s21 }
  0x21   :  { %v79_v9 = vsub.s32 5, %v58_v1  ;;  %v87_v10 = vsub.s32 7, %v58_v1  ;;  %227 = vmatprep.subr.bf16.mxu0 %v2058_v21  ;;  %267 = vmatprep.subr.bf16.mxu1 %v2067_v24  ;;  %v75_v29 = vsub.s32 4, %v58_v1  ;;  %v83_v30 = vsub.s32 6, %v58_v1  ;;  %v51_v61 = vld [vmem:[#allocation2 + $0x60] sm:$0xff]  ;;  %v52_v62 = vld [vmem:[#allocation2 + $0x68] sm:$0xff] }
  0x22   :  { %v64_v16 = vrot.slane %v55_v8, %v63_v2  ;;  %v72_v17 = vrot.slane %v55_v8, %v71_v3  ;;  %v60_v19 = vrot.slane %v55_v8, %v59_v4  ;;  %v68_v20 = vrot.slane %v55_v8, %v67_v5  ;;  %v53_v3 = vld [vmem:[#allocation2 + $0x70] sm:$0xff]  ;;  %v54_v4 = vld [vmem:[#allocation2 + $0x78] sm:$0xff]  ;;  %p2002_p13 = por %p2001_p12, %p2000_p11 }
  0x23   :  { %v80_v25 = vrot.slane %v55_v8, %v79_v9  ;;  %v88_v26 = vrot.slane %v55_v8, %v87_v10  ;;  %v76_v39 = vrot.slane %v55_v8, %v75_v29  ;;  %v84_v40 = vrot.slane %v55_v8, %v83_v30 }
  0x24   :  { %v2062_v22 = vpack.c.bf16 %v64_v16, %v64_v16  ;;  %v2064_v23 = vpack.c.bf16 %v72_v17, %v72_v17  ;;  %v2071_v27 = vpack.c.bf16 %v60_v19, %v60_v19  ;;  %v2073_v28 = vpack.c.bf16 %v68_v20, %v68_v20  ;;  %p2003_p0 = pnand %p2002_p13, %p1996_p10 }
  0x25   :  { %v2080_v35 = vpack.c.bf16 %v80_v25, %v80_v25  ;;  %v2082_v36 = vpack.c.bf16 %v88_v26, %v88_v26  ;;  %v2096_v41 = vpack.c.bf16 %v76_v39, %v76_v39  ;;  %v2098_v42 = vpack.c.bf16 %v84_v40, %v84_v40 }
  0x26   :  { %165 = vmatprep.mubr.bf16.mxu0 %v2062_v22  ;;  %205 = vmatprep.mubr.bf16.mxu1 %v2064_v23  ;;  %v2100_v45 = vcombine.low %v43_v31, %v43_v31  ;;  %v2102_v46 = vcombine.low %v44_v32, %v44_v32  ;;  %v2104_v47 = vcombine.high %v45_v43, %v45_v43  ;;  %vm875_vm3 = vcmask 60416  }
  0x27   :  { %166 = vmatmul.mubr.bf16.vlgmr.msra.gmra.mxu0 %v2071_v27  ;;  %206 = vmatmul.mubr.bf16.vlgmr.msra.gmra.mxu1 %v2073_v28  ;;  %v2106_v48 = vcombine.high %v46_v44, %v46_v44  ;;  %v2116_v51 = vcombine.low %v45_v43, %v45_v43  ;;  %v2118_v52 = vcombine.low %v46_v44, %v46_v44  ;;  %vm921_vm4 = vcmask 1043456  }
  0x28   :  { %228 = vmatpush1.bf16.xpose.msra.mxu0 %v2076_v33  ;;  %268 = vmatpush1.bf16.xpose.msra.mxu1 %v2078_v34  ;;  %v2120_v53 = vcombine.high %v47_v49, %v47_v49  ;;  %v2122_v54 = vcombine.high %v48_v50, %v48_v50  ;;  %v2132_v57 = vcombine.low %v47_v49, %v47_v49  ;;  %vm917_vm5 = vcmask 64512  }
  0x29   :  { %245 = vmatprep.mubr.bf16.mxu0 %v2080_v35  ;;  %285 = vmatprep.mubr.bf16.mxu1 %v2082_v36  ;;  %v2134_v58 = vcombine.low %v48_v50, %v48_v50  ;;  %v2136_v59 = vcombine.high %v49_v55, %v49_v55  ;;  %v2138_v60 = vcombine.high %v50_v56, %v50_v56  ;;  %vm1774_vm6 = vcmask 1045509  }
  0x2a   :  { %335 = vmatprep.subr.bf16.mxu0 %v2084_v37  ;;  %375 = vmatprep.subr.bf16.mxu1 %v2086_v38  ;;  %v2148_v63 = vcombine.low %v49_v55, %v49_v55  ;;  %v2150_v0 = vcombine.low %v50_v56, %v50_v56  ;;  %v2152_v1 = vcombine.high %v51_v61, %v51_v61  ;;  %vm1778_vm7 = vcmask 1046534  }
  0x2b   :  { %v2154_v2 = vcombine.high %v52_v62, %v52_v62  ;;  %v2164_v5 = vcombine.low %v51_v61, %v51_v61  ;;  %v2166_v6 = vcombine.low %v52_v62, %v52_v62  ;;  %v2168_v7 = vcombine.high %v53_v3, %v53_v3 }
  0x2c   :  { %v2170_v8 = vcombine.high %v54_v4, %v54_v4  ;;  %v2180_v9 = vcombine.low %v53_v3, %v53_v3  ;;  %v2182_v10 = vcombine.low %v54_v4, %v54_v4  ;;  %vm1782_vm8 = vcmask 1047559  }
  0x2f   :  { %246 = vmatmul.mubr.bf16.vlgmr.msra.gmra.mxu0 %v2096_v41  ;;  %286 = vmatmul.mubr.bf16.vlgmr.msra.gmra.mxu1 %v2098_v42 }
  0x30   :  { %336 = vmatpush1.bf16.xpose.msra.mxu0 %v2100_v45  ;;  %376 = vmatpush1.bf16.xpose.msra.mxu1 %v2102_v46 }
  0x31   :  { %353 = vmatprep.mubr.bf16.mxu0 %v2062_v22  ;;  %393 = vmatprep.mubr.bf16.mxu1 %v2064_v23 }
  0x32   :  { %415 = vmatprep.subr.bf16.mxu0 %v2104_v47  ;;  %455 = vmatprep.subr.bf16.mxu1 %v2106_v48 }
  0x37   :  { %354 = vmatmul.mubr.bf16.vlgmr.msra.gmra.mxu0 %v2071_v27  ;;  %394 = vmatmul.mubr.bf16.vlgmr.msra.gmra.mxu1 %v2073_v28 }
  0x38   :  { %416 = vmatpush1.bf16.xpose.msra.mxu0 %v2116_v51  ;;  %456 = vmatpush1.bf16.xpose.msra.mxu1 %v2118_v52 }
  0x39   :  { %433 = vmatprep.mubr.bf16.mxu0 %v2080_v35  ;;  %473 = vmatprep.mubr.bf16.mxu1 %v2082_v36 }
  0x3a   :  { %523 = vmatprep.subr.bf16.mxu0 %v2120_v53  ;;  %563 = vmatprep.subr.bf16.mxu1 %v2122_v54 }
  0x3f   :  { %434 = vmatmul.mubr.bf16.vlgmr.msra.gmra.mxu0 %v2096_v41  ;;  %474 = vmatmul.mubr.bf16.vlgmr.msra.gmra.mxu1 %v2098_v42 }
  0x40   :  { %524 = vmatpush1.bf16.xpose.msra.mxu0 %v2132_v57  ;;  %564 = vmatpush1.bf16.xpose.msra.mxu1 %v2134_v58 }
  0x41   :  { %541 = vmatprep.mubr.bf16.mxu0 %v2062_v22  ;;  %581 = vmatprep.mubr.bf16.mxu1 %v2064_v23 }
  0x42   :  { %603 = vmatprep.subr.bf16.mxu0 %v2136_v59  ;;  %643 = vmatprep.subr.bf16.mxu1 %v2138_v60 }
  0x47   :  { %542 = vmatmul.mubr.bf16.vlgmr.msra.gmra.mxu0 %v2071_v27  ;;  %582 = vmatmul.mubr.bf16.vlgmr.msra.gmra.mxu1 %v2073_v28 }
  0x48   :  { %604 = vmatpush1.bf16.xpose.msra.mxu0 %v2148_v63  ;;  %644 = vmatpush1.bf16.xpose.msra.mxu1 %v2150_v0 }
  0x49   :  { %621 = vmatprep.mubr.bf16.mxu0 %v2080_v35  ;;  %661 = vmatprep.mubr.bf16.mxu1 %v2082_v36 }
  0x4a   :  { %711 = vmatprep.subr.bf16.mxu0 %v2152_v1  ;;  %751 = vmatprep.subr.bf16.mxu1 %v2154_v2 }
  0x4f   :  { %622 = vmatmul.mubr.bf16.vlgmr.msra.gmra.mxu0 %v2096_v41  ;;  %662 = vmatmul.mubr.bf16.vlgmr.msra.gmra.mxu1 %v2098_v42 }
  0x50   :  { %712 = vmatpush1.bf16.xpose.msra.mxu0 %v2164_v5  ;;  %752 = vmatpush1.bf16.xpose.msra.mxu1 %v2166_v6 }
  0x51   :  { %729 = vmatprep.mubr.bf16.mxu0 %v2062_v22  ;;  %769 = vmatprep.mubr.bf16.mxu1 %v2064_v23 }
  0x52   :  { %791 = vmatprep.subr.bf16.mxu0 %v2168_v7  ;;  %831 = vmatprep.subr.bf16.mxu1 %v2170_v8 }
  0x57   :  { %730 = vmatmul.mubr.bf16.vlgmr.msra.gmra.mxu0 %v2071_v27  ;;  %770 = vmatmul.mubr.bf16.vlgmr.msra.gmra.mxu1 %v2073_v28 }
  0x58   :  { %792 = vmatpush1.bf16.xpose.msra.mxu0 %v2180_v9  ;;  %832 = vmatpush1.bf16.xpose.msra.mxu1 %v2182_v10 }
  0x59   :  { %809 = vmatprep.mubr.bf16.mxu0 %v2080_v35  ;;  %849 = vmatprep.mubr.bf16.mxu1 %v2082_v36 }
  0x5a   :  { %1867 = vmatprep.subr.msk.bf16.mxu0 %vm921_vm4, %v2048_v11  ;;  %1869 = vmatprep.subr.msk.bf16.mxu1 %vm921_vm4, %v2050_v12 }
  0x5f   :  { %810 = vmatmul.mubr.bf16.vlgmr.msra.gmra.mxu0 %v2096_v41  ;;  %850 = vmatmul.mubr.bf16.vlgmr.msra.gmra.mxu1 %v2098_v42 }
  0xe7   :  { %v167_v15 = vpop.f32.mrf.mxu0  ;;  %v207_v16 = vpop.f32.mrf.mxu1 }
  0xe9   :  { %v169_v17 = vpop.f32.mrf.mxu0  ;;  %v209_v18 = vpop.f32.mrf.mxu1 }
  0xeb   :  { %v170_v19 = vpop.f32.mrf.mxu0  ;;  %v210_v20 = vpop.f32.mrf.mxu1 }
  0xed   :  { %v171_v22 = vpop.f32.mrf.mxu0  ;;  %v211_v23 = vpop.f32.mrf.mxu1 }
  0xef   :  { %v247_v25 = vpop.f32.mrf.mxu0  ;;  %v287_v26 = vpop.f32.mrf.mxu1 }
  0xf1   :  { %v249_v27 = vpop.f32.mrf.mxu0  ;;  %v289_v28 = vpop.f32.mrf.mxu1 }
  0xf3   :  { %v250_v29 = vpop.f32.mrf.mxu0  ;;  %v290_v30 = vpop.f32.mrf.mxu1 }
  0xf5   :  { %v251_v31 = vpop.f32.mrf.mxu0  ;;  %v291_v32 = vpop.f32.mrf.mxu1 }
  0xf7   :  { %v355_v35 = vpop.f32.mrf.mxu0  ;;  %v395_v36 = vpop.f32.mrf.mxu1 }
  0xf9   :  { %v357_v39 = vpop.f32.mrf.mxu0  ;;  %v397_v40 = vpop.f32.mrf.mxu1 }
  0xfb   :  { %v358_v41 = vpop.f32.mrf.mxu0  ;;  %v398_v42 = vpop.f32.mrf.mxu1 }
  0xfc   :  { %v396_v41 = vadd.f32 %v395_v36, %v355_v35 }
  0xfd   :  { %v359_v43 = vpop.f32.mrf.mxu0  ;;  %v399_v44 = vpop.f32.mrf.mxu1 }
  0xff   :  { %v435_v49 = vpop.f32.mrf.mxu0  ;;  %v475_v50 = vpop.f32.mrf.mxu1 }
 0x101   :  { %v437_v55 = vpop.f32.mrf.mxu0  ;;  %v477_v56 = vpop.f32.mrf.mxu1 }
 0x102   :  { %v436_v55 = vadd.f32 %v435_v49, %v396_v41 }
 0x103   :  { %v438_v61 = vpop.f32.mrf.mxu0  ;;  %v478_v62 = vpop.f32.mrf.mxu1 }
 0x105   :  { %v439_v3 = vpop.f32.mrf.mxu0  ;;  %v479_v4 = vpop.f32.mrf.mxu1 }
 0x106   :  { %v208_v3 = vadd.f32 %v207_v16, %v167_v15 }
 0x107   :  { %v543_v17 = vpop.f32.mrf.mxu0  ;;  %v583_v18 = vpop.f32.mrf.mxu1 }
 0x108   :  { %v584_v42 = vadd.f32 %v583_v18, %v543_v17 }
 0x109   :  { %v545_v19 = vpop.f32.mrf.mxu0  ;;  %v585_v20 = vpop.f32.mrf.mxu1 }
 0x10a   :  { %v476_v20 = vadd.f32 %v475_v50, %v436_v55 }
 0x10b   :  { %v546_v22 = vpop.f32.mrf.mxu0  ;;  %v586_v23 = vpop.f32.mrf.mxu1 }
 0x10c   :  { %v248_v22 = vadd.f32 %v247_v25, %v208_v3  ;;  %1937 = vtanh.f32 %v476_v20  ;;  %v2025_v20 = vmov 0  }
 0x10d   :  { %v547_v27 = vpop.f32.mrf.mxu0  ;;  %v587_v28 = vpop.f32.mrf.mxu1  ;;  %978 = vmatprep.mubr.bf16.mxu0 %v2025_v20  ;;  %1019 = vmatprep.mubr.bf16.mxu1 %v2025_v20 }
 0x10e   :  { %v288_v35 = vadd.f32 %v287_v26, %v248_v22 }
 0x10f   :  { %v623_v29 = vpop.f32.mrf.mxu0  ;;  %v663_v30 = vpop.f32.mrf.mxu1 }
 0x110   :  { %v624_v56 = vadd.f32 %v623_v29, %v584_v42 }
 0x111   :  { %v625_v31 = vpop.f32.mrf.mxu0  ;;  %v665_v32 = vpop.f32.mrf.mxu1 }
 0x112   :  { %v664_v23 = vadd.f32 %v663_v30, %v624_v56 }
 0x113   :  { %v626_v39 = vpop.f32.mrf.mxu0  ;;  %v666_v40 = vpop.f32.mrf.mxu1 }
 0x114   :  { %1939 = vtanh.f32 %v664_v23 }
 0x115   :  { %v627_v43 = vpop.f32.mrf.mxu0  ;;  %v667_v44 = vpop.f32.mrf.mxu1  ;;  %1941 = vtanh.f32 %v288_v35 }
 0x117   :  { %v731_v61 = vpop.f32.mrf.mxu0  ;;  %v771_v62 = vpop.f32.mrf.mxu1 }
 0x118   :  { %v772_v39 = vadd.f32 %v771_v62, %v731_v61 }
 0x119   :  { %v733_v4 = vpop.f32.mrf.mxu0  ;;  %v773_v19 = vpop.f32.mrf.mxu1 }
 0x11a   :  { %v1938_v30 = vpop.eup %1937  ;;  %v923_v4 = vsel %vm921_vm4, %v2052_v13, 0  ;;  %v929_v19 = vsel %vm921_vm4, %v2054_v14, 0 }
 0x11b   :  { %v734_v27 = vpop.f32.mrf.mxu0  ;;  %v774_v28 = vpop.f32.mrf.mxu1  ;;  %v865_v42 = vrot.slane %v1938_v30, 7  ;;  %961 = vmatpush1.bf16.msra.mxu0 %v923_v4  ;;  %1002 = vmatpush1.bf16.msra.mxu1 %v929_v19 }
 0x11c   :  { %1871 = vmatprep.subr.msk.bf16.mxu0 %vm921_vm4, %v2058_v21  ;;  %1873 = vmatprep.subr.msk.bf16.mxu1 %vm921_vm4, %v2067_v24  ;;  %v935_v24 = vsel %vm921_vm4, %v2076_v33, 0 }
 0x11d   :  { %v735_v31 = vpop.f32.mrf.mxu0  ;;  %v775_v32 = vpop.f32.mrf.mxu1 }
 0x11f   :  { %v811_v36 = vpop.f32.mrf.mxu0  ;;  %v851_v17 = vpop.f32.mrf.mxu1 }
 0x120   :  { %v812_v49 = vadd.f32 %v811_v36, %v772_v39 }
 0x121   :  { %v813_v18 = vpop.f32.mrf.mxu0  ;;  %v853_v29 = vpop.f32.mrf.mxu1 }
 0x122   :  { %v852_v40 = vadd.f32 %v851_v17, %v812_v49  ;;  %v1940_v41 = vpop.eup %1939  ;;  %v941_v17 = vsel %vm921_vm4, %v2078_v34, 0 }
 0x123   :  { %v814_v15 = vpop.f32.mrf.mxu0  ;;  %v854_v16 = vpop.f32.mrf.mxu1  ;;  %v868_v43 = vrot.slane %v1940_v41, 6 }
 0x124   :  { %1943 = vtanh.f32 %v852_v40  ;;  %v1942_v44 = vpop.eup %1941 }
 0x125   :  { %v815_v25 = vpop.f32.mrf.mxu0  ;;  %v855_v50 = vpop.f32.mrf.mxu1  ;;  %v867_v55 = vsel %vm866_vm0, %v865_v42, %v1942_v44 }
 0x126   :  { %v870_v61 = vsel %vm869_vm1, %v868_v43, %v867_v55 }
 0x131   :  { %v1944_v26 = vpop.eup %1943 }
 0x132   :  { %v871_v56 = vrot.slane %v1944_v26, 5 }
 0x134   :  { %v873_v62 = vsel %vm872_vm2, %v871_v56, %v870_v61 }
 0x135   :  { %v876_v3 = vsel %vm875_vm3, %v873_v62, -inf }
 0x136   :  { %877 = vmax.xlane.f32.xlu0 %v876_v3 }
 0x1bf   :  { %v878_v11 = vpop.xlane.xlu0 %877 }
 0x1c0   :  { %v880_v12 = vrot.slane %v878_v11, 1  ;;  %v881_v22 = vrot.slane %v878_v11, 2  ;;  %v882_v13 = vrot.slane %v878_v11, 3  ;;  %v887_v23 = vsub.f32 %v1942_v44, %v878_v11 }
 0x1c2   :  { %v888_v27 = vsub.f32 %v1938_v30, %v880_v12  ;;  %v889_v14 = vsub.f32 %v1940_v41, %v881_v22  ;;  %v890_v28 = vsub.f32 %v1944_v26, %v882_v13  ;;  %v891_v31 = vmul.f32 1.442695, %v887_v23 }
 0x1c3   :  { %v1114_v30 = vsel %vm921_vm4, %v2100_v45, 0  ;;  %v1120_v41 = vsel %vm921_vm4, %v2102_v46, 0  ;;  %v1132_v45 = vsel %vm921_vm4, %v2118_v52, 0  ;;  %v1305_v46 = vsel %vm921_vm4, %v2132_v57, 0 }
 0x1c4   :  { %1945 = vpow2.f32 %v891_v31  ;;  %v893_v32 = vmul.f32 1.442695, %v888_v27  ;;  %v895_v39 = vmul.f32 1.442695, %v889_v14  ;;  %v897_v35 = vmul.f32 1.442695, %v890_v28 }
 0x1c5   :  { %v1323_v52 = vsel %vm921_vm4, %v2150_v0, 0 }
 0x1c6   :  { %1947 = vpow2.f32 %v893_v32 }
 0x1c7   :  { %1949 = vpow2.f32 %v895_v39 }
 0x1c8   :  { %1951 = vpow2.f32 %v897_v35 }
 0x1d1   :  { %v1946_v21 = vpop.eup %1945 }
 0x1d2   :  { %v913_v36 = vpack.c.bf16 %v1946_v21, %v1946_v21 }
 0x1d3   :  { %v1948_v49 = vpop.eup %1947 }
 0x1d4   :  { %v1950_v18 = vpop.eup %1949  ;;  %1868 = vmatmul.mubr.msk.bf16.vlgmr.msra.gmra.mxu0 %vm917_vm5, %v913_v36  ;;  %1870 = vmatmul.mubr.msk.bf16.vlgmr.msra.gmra.mxu1 %vm917_vm5, %v913_v36  ;;  %v903_v29 = vrot.slane %v1948_v49, 7 }
 0x1d5   :  { %v2216_v40 = vpop.eup %1951  ;;  %1043 = vmatpush1.bf16.msra.mxu0 %v935_v24  ;;  %1084 = vmatpush1.bf16.msra.mxu1 %v941_v17  ;;  %v905_v15 = vrot.slane %v1950_v18, 6 }
 0x1d6   :  { %v904_v16 = vsel %vm866_vm0, %v903_v29, %v1946_v21  ;;  %v907_v25 = vrot.slane %v2216_v40, 5  ;;  %1060 = vmatprep.mubr.bf16.mxu0 %v2025_v20  ;;  %1101 = vmatprep.mubr.bf16.mxu1 %v2025_v20  ;;  %v916_v57 = vpack.c.bf16 %v2216_v40, %v2216_v40 }
 0x1d7   :  { %v906_v33 = vsel %vm869_vm1, %v905_v15, %v904_v16  ;;  %1875 = vmatprep.subr.msk.bf16.mxu0 %vm921_vm4, %v2084_v37  ;;  %1877 = vmatprep.subr.msk.bf16.mxu1 %vm921_vm4, %v2086_v38  ;;  %v914_v37 = vpack.c.bf16 %v1948_v49, %v1948_v49  ;;  %v1126_v38 = vsel %vm921_vm4, %v2116_v51, 0  ;;  %v1317_v51 = vsel %vm921_vm4, %v2148_v63, 0 }
 0x1d8   :  { %v908_v34 = vsel %vm872_vm2, %v907_v25, %v906_v33 }
 0x1d9   :  { %v910_v50 = vsel %vm875_vm3, %v908_v34, 0.0 }
 0x1da   :  { %911 = vadd.xlane.f32.xlu0 %v910_v50 }
 0x1dc   :  { %1872 = vmatmul.mubr.msk.bf16.vlgmr.msra.gmra.mxu0 %vm917_vm5, %v913_v36  ;;  %1874 = vmatmul.mubr.msk.bf16.vlgmr.msra.gmra.mxu1 %vm917_vm5, %v913_v36 }
 0x1dd   :  { %1152 = vmatpush1.bf16.msra.mxu0 %v1114_v30  ;;  %1193 = vmatpush1.bf16.msra.mxu1 %v1120_v41 }
 0x1de   :  { %1169 = vmatprep.mubr.bf16.mxu0 %v2025_v20  ;;  %1210 = vmatprep.mubr.bf16.mxu1 %v2025_v20 }
 0x1df   :  { %1879 = vmatprep.subr.msk.bf16.mxu0 %vm921_vm4, %v2104_v47  ;;  %1881 = vmatprep.subr.msk.bf16.mxu1 %vm921_vm4, %v2106_v48  ;;  %v1311_v47 = vsel %vm921_vm4, %v2134_v58, 0  ;;  %v915_v48 = vpack.c.bf16 %v1950_v18, %v1950_v18  ;;  %v1508_v58 = vsel %vm921_vm4, %v2180_v9, 0 }
 0x1e4   :  { %1876 = vmatmul.mubr.msk.bf16.vlgmr.msra.gmra.mxu0 %vm917_vm5, %v914_v37  ;;  %1878 = vmatmul.mubr.msk.bf16.vlgmr.msra.gmra.mxu1 %vm917_vm5, %v914_v37 }
 0x1e5   :  { %1234 = vmatpush1.bf16.msra.mxu0 %v1126_v38  ;;  %1275 = vmatpush1.bf16.msra.mxu1 %v1132_v45 }
 0x1e6   :  { %1251 = vmatprep.mubr.bf16.mxu0 %v2025_v20  ;;  %1292 = vmatprep.mubr.bf16.mxu1 %v2025_v20 }
 0x1e7   :  { %1883 = vmatprep.subr.msk.bf16.mxu0 %vm921_vm4, %v2120_v53  ;;  %1885 = vmatprep.subr.msk.bf16.mxu1 %vm921_vm4, %v2122_v54  ;;  %v1496_v53 = vsel %vm921_vm4, %v2164_v5, 0  ;;  %v1502_v54 = vsel %vm921_vm4, %v2166_v6, 0 }
 0x1ec   :  { %1880 = vmatmul.mubr.msk.bf16.vlgmr.msra.gmra.mxu0 %vm917_vm5, %v914_v37  ;;  %1882 = vmatmul.mubr.msk.bf16.vlgmr.msra.gmra.mxu1 %vm917_vm5, %v914_v37 }
 0x1ed   :  { %1343 = vmatpush1.bf16.msra.mxu0 %v1305_v46  ;;  %1384 = vmatpush1.bf16.msra.mxu1 %v1311_v47 }
 0x1ee   :  { %1360 = vmatprep.mubr.bf16.mxu0 %v2025_v20  ;;  %1401 = vmatprep.mubr.bf16.mxu1 %v2025_v20 }
 0x1ef   :  { %1887 = vmatprep.subr.msk.bf16.mxu0 %vm921_vm4, %v2136_v59  ;;  %1889 = vmatprep.subr.msk.bf16.mxu1 %vm921_vm4, %v2138_v60  ;;  %v1514_v59 = vsel %vm921_vm4, %v2182_v10, 0 }
 0x1f4   :  { %1884 = vmatmul.mubr.msk.bf16.vlgmr.msra.gmra.mxu0 %vm917_vm5, %v915_v48  ;;  %1886 = vmatmul.mubr.msk.bf16.vlgmr.msra.gmra.mxu1 %vm917_vm5, %v915_v48 }
 0x1f5   :  { %1425 = vmatpush1.bf16.msra.mxu0 %v1317_v51  ;;  %1466 = vmatpush1.bf16.msra.mxu1 %v1323_v52 }
 0x1f6   :  { %1442 = vmatprep.mubr.bf16.mxu0 %v2025_v20  ;;  %1483 = vmatprep.mubr.bf16.mxu1 %v2025_v20 }
 0x1f7   :  { %1891 = vmatprep.subr.msk.bf16.mxu0 %vm921_vm4, %v2152_v1  ;;  %1893 = vmatprep.subr.msk.bf16.mxu1 %vm921_vm4, %v2154_v2 }
 0x1fc   :  { %1888 = vmatmul.mubr.msk.bf16.vlgmr.msra.gmra.mxu0 %vm917_vm5, %v915_v48  ;;  %1890 = vmatmul.mubr.msk.bf16.vlgmr.msra.gmra.mxu1 %vm917_vm5, %v915_v48 }
 0x1fd   :  { %1534 = vmatpush1.bf16.msra.mxu0 %v1496_v53  ;;  %1575 = vmatpush1.bf16.msra.mxu1 %v1502_v54 }
 0x1fe   :  { %1551 = vmatprep.mubr.bf16.mxu0 %v2025_v20  ;;  %1592 = vmatprep.mubr.bf16.mxu1 %v2025_v20 }
 0x1ff   :  { %1895 = vmatprep.subr.msk.bf16.mxu0 %vm921_vm4, %v2168_v7  ;;  %1897 = vmatprep.subr.msk.bf16.mxu1 %vm921_vm4, %v2170_v8 }
 0x204   :  { %1892 = vmatmul.mubr.msk.bf16.vlgmr.msra.gmra.mxu0 %vm917_vm5, %v916_v57  ;;  %1894 = vmatmul.mubr.msk.bf16.vlgmr.msra.gmra.mxu1 %vm917_vm5, %v916_v57 }
 0x205   :  { %1616 = vmatpush1.bf16.msra.mxu0 %v1508_v58  ;;  %1657 = vmatpush1.bf16.msra.mxu1 %v1514_v59 }
 0x206   :  { %1633 = vmatprep.mubr.bf16.mxu0 %v2025_v20  ;;  %1674 = vmatprep.mubr.bf16.mxu1 %v2025_v20 }
 0x20c   :  { %1896 = vmatmul.mubr.msk.bf16.vlgmr.msra.gmra.mxu0 %vm917_vm5, %v916_v57  ;;  %1898 = vmatmul.mubr.msk.bf16.vlgmr.msra.gmra.mxu1 %vm917_vm5, %v916_v57 }
 0x263   :  { %v912_v26 = vpop.xlane.xlu0 %911 }
 0x264   :  { %1953 = vrcp.f32 %v912_v26 }
 0x271   :  { %v1954_v31 = vpop.eup %1953 }
 0x272   :  { %v1685_v36 = vrot.slane %v1954_v31, 1  ;;  %v1686_v25 = vrot.slane %v1954_v31, 2 }
 0x294   :  { %v980_v60 = vpop.f32.mrf.mxu0  ;;  %v1021_v63 = vpop.f32.mrf.mxu1 }
 0x295   :  { %v1692_v54 = vmul.f32 %v1954_v31, %v980_v60  ;;  %v1694_v57 = vmul.f32 %v1954_v31, %v1021_v63 }
 0x296   :  { %v982_v0 = vpop.f32.mrf.mxu0  ;;  %v1023_v1 = vpop.f32.mrf.mxu1 }
 0x297   :  { %v1693_v46 = vmul.f32 %v1954_v31, %v982_v0  ;;  %v1695_v47 = vmul.f32 %v1954_v31, %v1023_v1 }
 0x298   :  { %v984_v2 = vpop.f32.mrf.mxu0  ;;  %v1025_v5 = vpop.f32.mrf.mxu1 }
 0x299   :  { %v1756_v26 = vcombine.low %v1692_v54, %v1693_v46 }
 0x29a   :  { %v985_v6 = vpop.f32.mrf.mxu0  ;;  %v1026_v7 = vpop.f32.mrf.mxu1 }
 0x29c   :  { %v2301_v8 = vpop.f32.mrf.mxu0  ;;  %v2303_v9 = vpop.f32.mrf.mxu1 }
 0x29d   :  { %v1696_v60 = vmul.f32 %v1954_v31, %v2301_v8  ;;  %v1698_v63 = vmul.f32 %v1954_v31, %v2303_v9 }
 0x29e   :  { %v2305_v10 = vpop.f32.mrf.mxu0  ;;  %v2307_v42 = vpop.f32.mrf.mxu1 }
 0x2a0   :  { %v1066_v43 = vpop.f32.mrf.mxu0  ;;  %v1107_v44 = vpop.f32.mrf.mxu1 }
 0x2a2   :  { %v1067_v55 = vpop.f32.mrf.mxu0  ;;  %v1108_v56 = vpop.f32.mrf.mxu1 }
 0x2a3   :  { %v1757_v55 = vcombine.low %v1694_v57, %v1695_v47 }
 0x2a4   :  { %v1171_v61 = vpop.f32.mrf.mxu0  ;;  %v1212_v62 = vpop.f32.mrf.mxu1 }
 0x2a5   :  { %v1700_v15 = vmul.f32 %v1685_v36, %v1171_v61  ;;  %v1702_v16 = vmul.f32 %v1685_v36, %v1212_v62  ;;  %v1687_v62 = vrot.slane %v1954_v31, 3 }
 0x2a6   :  { %v1173_v3 = vpop.f32.mrf.mxu0  ;;  %v1214_v4 = vpop.f32.mrf.mxu1 }
 0x2a7   :  { %v1701_v49 = vmul.f32 %v1685_v36, %v1173_v3  ;;  %v1703_v18 = vmul.f32 %v1685_v36, %v1214_v4 }
 0x2a8   :  { %v1175_v19 = vpop.f32.mrf.mxu0  ;;  %v1216_v20 = vpop.f32.mrf.mxu1 }
 0x2a9   :  { %v1760_v50 = vcombine.low %v1700_v15, %v1701_v49  ;;  %v1761_v30 = vcombine.low %v1702_v16, %v1703_v18 }
 0x2aa   :  { %v1176_v11 = vpop.f32.mrf.mxu0  ;;  %v1217_v12 = vpop.f32.mrf.mxu1 }
 0x2ab   :  { %v1772_v58 = vrot.slane %v1760_v50, 7  ;;  %v1784_v59 = vrot.slane %v1761_v30, 7 }
 0x2ac   :  { %v1253_v22 = vpop.f32.mrf.mxu0  ;;  %v1294_v13 = vpop.f32.mrf.mxu1 }
 0x2ad   :  { %v1704_v56 = vmul.f32 %v1685_v36, %v1253_v22  ;;  %v1706_v0 = vmul.f32 %v1685_v36, %v1294_v13  ;;  %v1773_v3 = vsel %vm866_vm0, %v1772_v58, %v1756_v26  ;;  %v1785_v4 = vsel %vm866_vm0, %v1784_v59, %v1757_v55 }
 0x2ae   :  { %v1255_v23 = vpop.f32.mrf.mxu0  ;;  %v1296_v27 = vpop.f32.mrf.mxu1  ;;  %v1697_v22 = vmul.f32 %v1954_v31, %v2305_v10  ;;  %v1699_v13 = vmul.f32 %v1954_v31, %v2307_v42  ;;  %v1775_v8 = vsel %vm1774_vm6, %v1772_v58, %v1773_v3  ;;  %v1786_v9 = vsel %vm1774_vm6, %v1784_v59, %v1785_v4 }
 0x2af   :  { %v1705_v2 = vmul.f32 %v1685_v36, %v1255_v23  ;;  %v1707_v5 = vmul.f32 %v1685_v36, %v1296_v27 }
 0x2b0   :  { %v1257_v14 = vpop.f32.mrf.mxu0  ;;  %v1298_v28 = vpop.f32.mrf.mxu1  ;;  %v1758_v50 = vcombine.low %v1696_v60, %v1697_v22 }
 0x2b1   :  { %v1762_v19 = vcombine.low %v1704_v56, %v1705_v2  ;;  %v1763_v20 = vcombine.low %v1706_v0, %v1707_v5 }
 0x2b2   :  { %v1258_v32 = vpop.f32.mrf.mxu0  ;;  %v1299_v39 = vpop.f32.mrf.mxu1 }
 0x2b3   :  { %v1793_v18 = vrot.slane %v1762_v19, 7 }
 0x2b4   :  { %v1362_v35 = vpop.f32.mrf.mxu0  ;;  %v1403_v21 = vpop.f32.mrf.mxu1 }
 0x2b5   :  { %v1708_v48 = vmul.f32 %v1686_v25, %v1362_v35  ;;  %v1710_v51 = vmul.f32 %v1686_v25, %v1403_v21 }
 0x2b6   :  { %v1364_v24 = vpop.f32.mrf.mxu0  ;;  %v1405_v17 = vpop.f32.mrf.mxu1 }
 0x2b7   :  { %v1709_v41 = vmul.f32 %v1686_v25, %v1364_v24  ;;  %v1711_v37 = vmul.f32 %v1686_v25, %v1405_v17 }
 0x2b8   :  { %v1366_v29 = vpop.f32.mrf.mxu0  ;;  %v1407_v40 = vpop.f32.mrf.mxu1 }
 0x2b9   :  { %v1764_v6 = vcombine.low %v1708_v48, %v1709_v41  ;;  %v1765_v7 = vcombine.low %v1710_v51, %v1711_v37  ;;  %v1802_v29 = vrot.slane %v1763_v20, 7 }
 0x2ba   :  { %v1367_v33 = vpop.f32.mrf.mxu0  ;;  %v1408_v34 = vpop.f32.mrf.mxu1 }
 0x2bb   :  { %v1776_v11 = vrot.slane %v1764_v6, 6  ;;  %v1787_v12 = vrot.slane %v1765_v7, 6 }
 0x2bc   :  { %v1444_v38 = vpop.f32.mrf.mxu0  ;;  %v1485_v45 = vpop.f32.mrf.mxu1 }
 0x2bd   :  { %v1712_v32 = vmul.f32 %v1686_v25, %v1444_v38  ;;  %v1714_v39 = vmul.f32 %v1686_v25, %v1485_v45  ;;  %v1777_v10 = vsel %vm869_vm1, %v1776_v11, %v1775_v8  ;;  %v1788_v42 = vsel %vm869_vm1, %v1787_v12, %v1786_v9 }
 0x2be   :  { %v1446_v52 = vpop.f32.mrf.mxu0  ;;  %v1487_v53 = vpop.f32.mrf.mxu1  ;;  %v1794_v45 = vsel %vm866_vm0, %v1793_v18, %v1758_v50  ;;  %v1779_v47 = vsel %vm1778_vm7, %v1776_v11, %v1777_v10  ;;  %v1789_v48 = vsel %vm1778_vm7, %v1787_v12, %v1788_v42 }
 0x2bf   :  { %v1713_v14 = vmul.f32 %v1686_v25, %v1446_v52  ;;  %v1715_v28 = vmul.f32 %v1686_v25, %v1487_v53  ;;  %v1759_v25 = vcombine.low %v1698_v63, %v1699_v13  ;;  %v1795_v55 = vsel %vm1774_vm6, %v1793_v18, %v1794_v45 }
 0x2c0   :  { %v1448_v43 = vpop.f32.mrf.mxu0  ;;  %v1489_v44 = vpop.f32.mrf.mxu1 }
 0x2c1   :  { %v1766_v15 = vcombine.low %v1712_v32, %v1713_v14  ;;  %v1767_v16 = vcombine.low %v1714_v39, %v1715_v28  ;;  %v1803_v46 = vsel %vm866_vm0, %v1802_v29, %v1759_v25 }
 0x2c2   :  { %v1449_v1 = vpop.f32.mrf.mxu0  ;;  %v1490_v61 = vpop.f32.mrf.mxu1  ;;  %v1804_v56 = vsel %vm1774_vm6, %v1802_v29, %v1803_v46 }
 0x2c3   :  { %v1796_v53 = vrot.slane %v1766_v15, 6  ;;  %v1805_v54 = vrot.slane %v1767_v16, 6 }
 0x2c4   :  { %v1553_v23 = vpop.f32.mrf.mxu0  ;;  %v1594_v27 = vpop.f32.mrf.mxu1 }
 0x2c5   :  { %v1716_v36 = vmul.f32 %v1687_v62, %v1553_v23  ;;  %v1718_v24 = vmul.f32 %v1687_v62, %v1594_v27  ;;  %v1797_v61 = vsel %vm869_vm1, %v1796_v53, %v1795_v55  ;;  %v1806_v60 = vsel %vm869_vm1, %v1805_v54, %v1804_v56 }
 0x2c6   :  { %v1555_v35 = vpop.f32.mrf.mxu0  ;;  %v1596_v21 = vpop.f32.mrf.mxu1  ;;  %v1807_v12 = vsel %vm1778_vm7, %v1805_v54, %v1806_v60 }
 0x2c7   :  { %v1717_v17 = vmul.f32 %v1687_v62, %v1555_v35  ;;  %v1719_v49 = vmul.f32 %v1687_v62, %v1596_v21 }
 0x2c8   :  { %v1557_v31 = vpop.f32.mrf.mxu0  ;;  %v1598_v40 = vpop.f32.mrf.mxu1 }
 0x2c9   :  { %v1768_v33 = vcombine.low %v1716_v36, %v1717_v17  ;;  %v1769_v34 = vcombine.low %v1718_v24, %v1719_v49 }
 0x2ca   :  { %v1558_v30 = vpop.f32.mrf.mxu0  ;;  %v1599_v41 = vpop.f32.mrf.mxu1 }
 0x2cb   :  { %v1780_v37 = vrot.slane %v1768_v33, 5  ;;  %v1790_v38 = vrot.slane %v1769_v34, 5 }
 0x2cc   :  { %v1635_v51 = vpop.f32.mrf.mxu0  ;;  %v1676_v52 = vpop.f32.mrf.mxu1 }
 0x2cd   :  { %v1781_v57 = vsel %vm872_vm2, %v1780_v37, %v1779_v47  ;;  %v1791_v58 = vsel %vm872_vm2, %v1790_v38, %v1789_v48  ;;  %v1720_v7 = vmul.f32 %v1687_v62, %v1635_v51  ;;  %v1722_v43 = vmul.f32 %v1687_v62, %v1676_v52 }
 0x2ce   :  { %v1783_v59 = vsel %vm1782_vm8, %v1780_v37, %v1781_v57  ;;  %v1792_v2 = vsel %vm1782_vm8, %v1790_v38, %v1791_v58  ;;  %v1637_v5 = vpop.f32.mrf.mxu0  ;;  %v1678_v6 = vpop.f32.mrf.mxu1 }
 0x2cf   :  { %1815 = vst [vmem:[#allocation7] sm:$0xff] %v1783_v59  ;;  %1816 = vst [vmem:[#allocation7 + $0x8] sm:$0xff] %v1792_v2  ;;  %v1721_v44 = vmul.f32 %v1687_v62, %v1637_v5  ;;  %v1723_v26 = vmul.f32 %v1687_v62, %v1678_v6  ;;  %v1798_v62 = vsel %vm1778_vm7, %v1796_v53, %v1797_v61 }
 0x2d0   :  { %v1639_v0 = vpop.f32.mrf.mxu0  ;;  %v1680_v1 = vpop.f32.mrf.mxu1 }
 0x2d1   :  { %v1770_v63 = vcombine.low %v1720_v7, %v1721_v44  ;;  %v1771_v3 = vcombine.low %v1722_v43, %v1723_v26 }
 0x2d2   :  { %v1640_v4 = vpop.f32.mrf.mxu0  ;;  %v1681_v19 = vpop.f32.mrf.mxu1 }
 0x2d3   :  { %v1799_v20 = vrot.slane %v1770_v63, 5  ;;  %v1808_v11 = vrot.slane %v1771_v3, 5 }
 0x2d5   :  { %v1800_v23 = vsel %vm872_vm2, %v1799_v20, %v1798_v62  ;;  %v1809_v27 = vsel %vm872_vm2, %v1808_v11, %v1807_v12 }
 0x2d6   :  { %v1801_v22 = vsel %vm1782_vm8, %v1799_v20, %v1800_v23  ;;  %v1810_v13 = vsel %vm1782_vm8, %v1808_v11, %v1809_v27 }
 0x2d7   :  { %1817 = vst [vmem:[#allocation7 + $0x10] sm:$0xff] %v1801_v22  ;;  %1818 = vst [vmem:[#allocation7 + $0x18] sm:$0xff] %v1810_v13 }
 0x2d8   :  { %2006 = shalt.err (!%p2003_p0)
}
 0x2d9   :  { %1828 = dma.vmem_to_hbm [thread:$0]  %s1826_s1, 512, %s2342_s2, [#allocation4]  }
 0x2da   :  { %2019 = dma.done.wait [#allocation4], 512  }
 0x2db   :  { %2020 = vsyncadd [#allocation4], 4294966784 }
 0x2dc   :  { %1832 = vsyncpa [#allocation3], 1 }
 0x2dd   :  { %1833 = vsyncpa [#allocation6], 1 }
 0x2de   :  { %1834 = vsyncpa [#allocation4], 1 }

</bundles_post_ra>
